<compile_context>
chip_gen: v7x
topology: tpu7x:2x2x1
jax: 0.10.0
libtpu: 0.0.40
codegen_flags: <defaults>
</compile_context>

<pallas_src>
import functools

import jax
import jax.numpy as jnp
from jax.experimental import pallas as pl
from jax.experimental.pallas import tpu as pltpu


# Above the 16/32 MiB scoped defaults, below v7x's 64 MiB physical VMEM.
_VMEM_LIMIT_BYTES = 48 * 1024 * 1024


# ---------------------------------------------------------------------------
# Kernel 1: fused projection, column-tiled over source nodes (feats^T input).
#   zcat^T = [W | W_res | W_er]^T @ x^T    -> rows: z^T (HF), res^T (HF), er^T (H)
# ---------------------------------------------------------------------------
def _proj_kernel(xT_ref, wT_ref, zT_ref, resT_ref, erT_ref, *, hf, num_heads):
    zcatT = jnp.dot(wT_ref[...], xT_ref[...],
                    preferred_element_type=jnp.float32)     # (2*HF+H, tp)
    zT_ref[...] = zcatT[:hf, :]                              # (HF, tp)
    resT_ref[...] = zcatT[hf:2 * hf, :]                      # (HF, tp)
    erT_ref[...] = zcatT[2 * hf:2 * hf + num_heads, :]       # (H,  tp)


# ---------------------------------------------------------------------------
# Kernel 2: masked softmax attention + aggregation + residual + bias.
#   Tiled over destination columns; z^T and el (all sources) stay resident in VMEM.
# ---------------------------------------------------------------------------
def _attn_kernel(zT_ref, el_ref, elmax_ref, erT_ref, adjT_ref, resT_ref, biasT_ref,
                 outT_ref, *, num_heads, out_feats, negative_slope):
    H, F = num_heads, out_feats
    slope = jnp.float32(negative_slope)

    # Additive adjacency mask, computed ONCE for all heads (hoisted out of the loop).
    neg_bias = jnp.where(adjT_ref[...] != 0,
                         jnp.float32(0.0), jnp.float32(-1e30))      # (N, td)

    zT = zT_ref[...]                      # (HF, N)  all sources, resident
    el = el_ref[...]                      # (N, H)   all sources, resident
    elmax = elmax_ref[...]                # (1, H)   global per-head max of el
    erT = erT_ref[...]                    # (H, td)  this dst tile
    n_src = zT.shape[1]
    ones_row = jnp.ones((1, n_src), jnp.float32)   # hoisted (denominator fold)

    head_outs = []
    for h in range(H):                    # H is small & static -> unrolled
        er_row = erT[h:h + 1, :]                              # (1, td)
        el_col = el[:, h:h + 1]                               # (N, 1)
        e = el_col + er_row                                   # (N, td)
        e = jnp.maximum(e, slope * e)                         # LeakyReLU (no select)
        e = e + neg_bias                                      # mask via add
        # Shift-invariant stabilisation with a global per-head bound instead of a
        # per-row reduction: leaky is monotone => leaky(er + el_max) >= leaky(er + el).
        v = er_row + elmax[:, h:h + 1]                        # (1, td)
        m = jnp.maximum(v, slope * v)
        p = jnp.exp(e - m)                                    # (N, td); masked -> 0
        # Aggregation with dst on the MXU output lanes; the ones row makes the last
        # output row the softmax denominator (row-sum of p) for free.
        zhT = zT[h * F:(h + 1) * F, :]                        # (F, N)
        lhs = jnp.concatenate([zhT, ones_row], axis=0)        # (F+1, N)
        acc = jnp.dot(lhs, p, preferred_element_type=jnp.float32)   # (F+1, td)
        inv = jnp.float32(1.0) / acc[F:F + 1, :]              # (1, td)
        head_outs.append(acc[:F, :] * inv)                    # (F, td)

    outT = jnp.concatenate(head_outs, axis=0)                 # (HF, td) lane-dense
    outT_ref[...] = outT + resT_ref[...] + biasT_ref[...]


def _pick_tile(n, target=256):
    """Largest multiple of 128 that divides n and is <= target; else n (full block)."""
    t = (min(target, n) // 128) * 128
    while t >= 128:
        if n % t == 0:
            return t
        t -= 128
    return n


def gat_layer_forward(feats, adj, params, *, num_heads, out_feats,
                      negative_slope=0.2, agg_mode='flatten', activation=None,
                      tile_dst=None, tile_src=None):
    N, d_in = feats.shape
    H, F = num_heads, out_feats
    HF = H * F
    f32 = jnp.float32

    feats = feats.astype(f32)
    W = params['w'].astype(f32)                 # (d_in, HF)
    Wres = params['w_res'].astype(f32)          # (d_in, HF)
    attn_l = params['attn_l'].astype(f32)       # (H, F)
    attn_r = params['attn_r'].astype(f32)       # (H, F)

    # Fold the attention-score projections into weight matrices:
    #   w_er[:, h] = W[:, h*F:(h+1)*F] @ attn_r[h];  same for w_el.
    w_er = jnp.einsum('dhf,hf->dh', W.reshape(d_in, H, F), attn_r)   # (d_in, H)
    w_el = jnp.einsum('dhf,hf->dh', W.reshape(d_in, H, F), attn_l)   # (d_in, H)
    wT_big = jnp.concatenate([W, Wres, w_er], axis=1).T              # (2*HF+H, d_in)

    # Pre-arranged inputs so that no in-kernel transposes are needed.
    xT = feats.T                                                     # (d_in, N)   tiny
    adjT_i8 = (adj != 0).astype(jnp.int8).T                          # (src, dst)  int8
    biasT = params['bias'].reshape(HF, 1).astype(f32)                # (HF, 1)

    # el and its global per-head max: tiny (N, d_in)@(d_in, H) XLA matmul; el is needed
    # column-oriented in kernel 2 and feeds the shift-invariant stabilisation.
    el = feats @ w_el                                                # (N, H)
    elmax = jnp.max(el, axis=0, keepdims=True)                       # (1, H)

    tp = tile_src if tile_src is not None else _pick_tile(N)
    td = tile_dst if tile_dst is not None else _pick_tile(N)
    assert N % tp == 0 and N % td == 0, "tile sizes must divide N"
    assert (tp % 128 == 0 or tp == N) and (td % 128 == 0 or td == N), \
        "tiles must be multiples of 128 (or the full N)"

    cparams = pltpu.CompilerParams(dimension_semantics=("parallel",),
                                   vmem_limit_bytes=_VMEM_LIMIT_BYTES)

    # ---- Kernel 1: fused projection (source-column tiled) ----
    zT, resT, erT = pl.pallas_call(
        functools.partial(_proj_kernel, hf=HF, num_heads=H),
        out_shape=(jax.ShapeDtypeStruct((HF, N), f32),
                   jax.ShapeDtypeStruct((HF, N), f32),
                   jax.ShapeDtypeStruct((H, N), f32)),
        grid=(N // tp,),
        in_specs=[
            pl.BlockSpec((d_in, tp), lambda i: (0, i)),          # x^T tile
            pl.BlockSpec((2 * HF + H, d_in), lambda i: (0, 0)),  # fused weights
        ],
        out_specs=(
            pl.BlockSpec((HF, tp), lambda i: (0, i)),            # z^T
            pl.BlockSpec((HF, tp), lambda i: (0, i)),            # res^T
            pl.BlockSpec((H, tp), lambda i: (0, i)),             # er^T
        ),
        compiler_params=cparams,
    )(xT, wT_big)

    # ---- Kernel 2: attention + aggregation (dst-column tiled) ----
    kernel = functools.partial(_attn_kernel, num_heads=H, out_feats=F,
                               negative_slope=negative_slope)
    outT = pl.pallas_call(
        kernel,
        out_shape=jax.ShapeDtypeStruct((HF, N), f32),
        grid=(N // td,),
        in_specs=[
            pl.BlockSpec((HF, N), lambda i: (0, 0)),   # z^T: all sources, resident
            pl.BlockSpec((N, H), lambda i: (0, 0)),    # el:  all sources, resident
            pl.BlockSpec((1, H), lambda i: (0, 0)),    # global per-head el max
            pl.BlockSpec((H, td), lambda i: (0, i)),   # er^T for this dst tile
            pl.BlockSpec((N, td), lambda i: (0, i)),   # adj^T (int8) for this dst tile
            pl.BlockSpec((HF, td), lambda i: (0, i)),  # residual^T for this dst tile
            pl.BlockSpec((HF, 1), lambda i: (0, 0)),   # bias^T
        ],
        out_specs=pl.BlockSpec((HF, td), lambda i: (0, i)),
        compiler_params=cparams,
    )(zT, el, elmax, erT, adjT_i8, resT, biasT)

    out = outT.T                                           # (N, HF); O(N*HF), tiny vs adj
    if agg_mode == 'flatten':
        new_feats = out
    else:  # 'mean'
        new_feats = out.reshape(N, H, F).mean(axis=1)
    if activation is not None:
        new_feats = activation(new_feats)
    return new_feats


def gat_reference(feats, adj, params, *, num_heads, out_feats, negative_slope=0.2):
    """Pure-JAX reference of the same math (for correctness check)."""
    N = feats.shape[0]
    z = feats @ params['w']
    zr = z.reshape(N, num_heads, out_feats)
    el = (zr * params['attn_l'][None]).sum(-1)           # (N, H)
    er = (zr * params['attn_r'][None]).sum(-1)           # (N, H)
    e = er[:, None, :] + el[None, :, :]                  # (dst, src, H)
    e = jnp.where(e > 0, e, negative_slope * e)
    e = jnp.where(adj[:, :, None] > 0, e, -1e30)
    e = e - e.max(axis=1, keepdims=True)
    p = jnp.exp(e) * adj[:, :, None]
    a = p / p.sum(axis=1, keepdims=True)
    out = jnp.einsum('dsh,shf->dhf', a, zr)
    res = (feats @ params['w_res']).reshape(N, num_heads, out_feats)
    out = out + res + params['bias'][None]
    return out.reshape(N, num_heads * out_feats)


if __name__ == "__main__":
    # Small, shape-consistent example: N atoms with in_feats features.
    N, in_feats, out_feats, num_heads = 256, 32, 16, 4
    alpha = 0.2

    key = jax.random.PRNGKey(0)
    k_x, k_adj, k_w, k_wr, k_al, k_ar = jax.random.split(key, 6)

    feats = jax.random.normal(k_x, (N, in_feats), dtype=jnp.float32)

    # Random graph with self-loops (adj[dst, src] = 1 if edge src->dst).  Self-loops
    # guarantee every destination has at least one incoming edge (no 0/0 softmax).
    adj = (jax.random.uniform(k_adj, (N, N)) < 0.3).astype(jnp.float32)
    adj = jnp.maximum(adj, jnp.eye(N, dtype=jnp.float32))

    HF = num_heads * out_feats
    gain = jnp.sqrt(2.0)  # DGL uses xavier_normal_(gain=sqrt(2))
    params = {
        'w': gain * jax.random.normal(k_w, (in_feats, HF), jnp.float32)
             * jnp.sqrt(2.0 / (in_feats + HF)),
        'w_res': gain * jax.random.normal(k_wr, (in_feats, HF), jnp.float32)
                 * jnp.sqrt(2.0 / (in_feats + HF)),
        'attn_l': gain * jax.random.normal(k_al, (num_heads, out_feats), jnp.float32)
                  * jnp.sqrt(2.0 / (1 + out_feats)),
        'attn_r': gain * jax.random.normal(k_ar, (num_heads, out_feats), jnp.float32)
                  * jnp.sqrt(2.0 / (1 + out_feats)),
        'bias': jnp.zeros((num_heads, out_feats), jnp.float32),  # DGL zero-init bias
    }

    # tile_dst/tile_src = 128 so both grids actually have >1 step at this small N.
    out = gat_layer_forward(feats, adj, params, num_heads=num_heads,
                            out_feats=out_feats, negative_slope=alpha,
                            agg_mode='flatten', activation=None,
                            tile_dst=128, tile_src=128)
    out = jax.block_until_ready(out)

    ref = gat_reference(feats, adj, params, num_heads=num_heads,
                        out_feats=out_feats, negative_slope=alpha)
    assert out.shape == (N, num_heads * out_feats)
    assert jnp.allclose(out, ref, rtol=1e-4, atol=1e-4), "mismatch vs JAX reference (flatten)"

    out_mean = gat_layer_forward(feats, adj, params, num_heads=num_heads,
                                 out_feats=out_feats, negative_slope=alpha,
                                 agg_mode='mean', activation=None,
                                 tile_dst=128, tile_src=128)
    out_mean = jax.block_until_ready(out_mean)
    ref_mean = ref.reshape(N, num_heads, out_feats).mean(axis=1)
    assert jnp.allclose(out_mean, ref_mean, rtol=1e-4, atol=1e-4), "mismatch (mean agg)"

    print("KERNEL_OK")
</pallas_src>

<mosaic_0001>
module attributes {stable_mosaic.version = 11 : i64} {
  func.func @_proj_kernel(%arg0: i32, %arg1: memref<32x128xf32, #tpu.memory_space<vmem>>, %arg2: memref<132x32xf32, #tpu.memory_space<vmem>>, %arg3: memref<64x128xf32, #tpu.memory_space<vmem>>, %arg4: memref<64x128xf32, #tpu.memory_space<vmem>>, %arg5: memref<4x128xf32, #tpu.memory_space<vmem>>) attributes {dimension_semantics = [#tpu.dimension_semantics<parallel>], iteration_bounds = array<i64: 2>, scalar_prefetch = 0 : i64, scratch_operands = 0 : i64, tpu.core_type = #tpu.core_type<tc>, window_params = [{transform_indices = @transform_0, window_bounds = array<i64: 32, 128>}, {pipeline_mode = #tpu.pipeline_mode<synchronous>, transform_indices = @transform_1, window_bounds = array<i64: 132, 32>}, {transform_indices = @transform_2, window_bounds = array<i64: 64, 128>}, {transform_indices = @transform_3, window_bounds = array<i64: 64, 128>}, {transform_indices = @transform_4, window_bounds = array<i64: 4, 128>}]} {
    %c0 = arith.constant 0 : index
    %c0_0 = arith.constant 0 : index
    %0 = vector.load %arg2[%c0, %c0_0] : memref<132x32xf32, #tpu.memory_space<vmem>>, vector<132x32xf32>
    %c0_1 = arith.constant 0 : index
    %c0_2 = arith.constant 0 : index
    %1 = vector.load %arg1[%c0_1, %c0_2] : memref<32x128xf32, #tpu.memory_space<vmem>>, vector<32x128xf32>
    %cst = arith.constant dense<0.000000e+00> : vector<132x128xf32>
    %2 = tpu.matmul %0, %1, %cst {dimension_numbers = #tpu.dot_dimension_numbers<[1], [0], [0], [1], [0, 0, 1, 1], [], []>} : vector<132x32xf32>, vector<32x128xf32>, vector<132x128xf32> -> vector<132x128xf32>
    %3 = vector.extract_strided_slice %2 {offsets = [0, 0], sizes = [64, 128], strides = [1, 1]} : vector<132x128xf32> to vector<64x128xf32>
    %c0_3 = arith.constant 0 : index
    %c0_4 = arith.constant 0 : index
    %4 = vector.load %arg3[%c0_3, %c0_4] : memref<64x128xf32, #tpu.memory_space<vmem>>, vector<64x128xf32>
    tpu.vector_store %arg3[%c0_3, %c0_4], %3 {strides = array<i32>} : memref<64x128xf32, #tpu.memory_space<vmem>>, vector<64x128xf32>,
    %5 = vector.extract_strided_slice %2 {offsets = [64, 0], sizes = [64, 128], strides = [1, 1]} : vector<132x128xf32> to vector<64x128xf32>
    %c0_5 = arith.constant 0 : index
    %c0_6 = arith.constant 0 : index
    %6 = vector.load %arg4[%c0_5, %c0_6] : memref<64x128xf32, #tpu.memory_space<vmem>>, vector<64x128xf32>
    tpu.vector_store %arg4[%c0_5, %c0_6], %5 {strides = array<i32>} : memref<64x128xf32, #tpu.memory_space<vmem>>, vector<64x128xf32>,
    %7 = vector.extract_strided_slice %2 {offsets = [128, 0], sizes = [4, 128], strides = [1, 1]} : vector<132x128xf32> to vector<4x128xf32>
    %c0_7 = arith.constant 0 : index
    %c0_8 = arith.constant 0 : index
    %8 = vector.load %arg5[%c0_7, %c0_8] : memref<4x128xf32, #tpu.memory_space<vmem>>, vector<4x128xf32>
    tpu.vector_store %arg5[%c0_7, %c0_8], %7 {strides = array<i32>} : memref<4x128xf32, #tpu.memory_space<vmem>>, vector<4x128xf32>,
    return
  }
  func.func @transform_0(%arg0: i32) -> (i32, i32) {
    %c0_i32 = arith.constant 0 : i32
    %c0_i32_0 = arith.constant 0 : i32
    return %c0_i32, %arg0 : i32, i32
  }
  func.func @transform_1(%arg0: i32) -> (i32, i32) {
    %c0_i32 = arith.constant 0 : i32
    %c0_i32_0 = arith.constant 0 : i32
    %c0_i32_1 = arith.constant 0 : i32
    return %c0_i32, %c0_i32_0 : i32, i32
  }
  func.func @transform_2(%arg0: i32) -> (i32, i32) {
    %c0_i32 = arith.constant 0 : i32
    %c0_i32_0 = arith.constant 0 : i32
    return %c0_i32, %arg0 : i32, i32
  }
  func.func @transform_3(%arg0: i32) -> (i32, i32) {
    %c0_i32 = arith.constant 0 : i32
    %c0_i32_0 = arith.constant 0 : i32
    return %c0_i32, %arg0 : i32, i32
  }
  func.func @transform_4(%arg0: i32) -> (i32, i32) {
    %c0_i32 = arith.constant 0 : i32
    %c0_i32_0 = arith.constant 0 : i32
    return %c0_i32, %arg0 : i32, i32
  }
}

</mosaic_0001>

<bundles_post_ra>
// kernel: tpu_custom_call.1
= control target key start
LH: loop header
LB: loop body
LE: loop exit
PB: predicated region body
PF: predicated region fallthrough
CT: control target
= control target key end

     0   :  { %s1341_s0 = inlined_call_operand.vmem [shape: f32[32,256], index: 0, kind: input, shape index: {}]   ;;  %s1342_s1 = inlined_call_operand.vmem [shape: f32[132,32], index: 1, kind: input, shape index: {}]   ;;  %s1343_s2 = inlined_call_operand.hbm [shape: f32[64,256], index: 2, kind: output, shape index: {0}]   ;;  %s1344_s3 = inlined_call_operand.hbm [shape: f32[64,256], index: 3, kind: output, shape index: {1}]   ;;  %s1345_s4 = inlined_call_operand.hbm [shape: f32[4,256], index: 4, kind: output, shape index: {2}]  }
   0x1   :  { %1347 = sst [smem:[#allocation10_spill]] %s1341_s0 }
   0x2   :  { %1348 = sst [smem:[#allocation11_spill]] %s1342_s1 }
   0x3   :  { %10 = vsyncpa [#allocation4], 0 }
   0x4   :  { %12 = vsyncpa [#allocation4 + $0x1], 0 }
   0x5   :  { %13 = vsyncpa [#allocation6], 0 }
   0x6   :  { %15 = vsyncpa [#allocation6 + $0x1], 0  ;;  %s1018_s15 = smov 0   ;;  %s1020_s16 = smov 0  }
   0x7   :  { %s1022_s17 = smov 0   ;;  %s1024_s18 = smov 0  }
   0x8 LB: > { %s1039_s19 = sadd.s32 4294967295, %s982_s18   ;;  %s1346_s20 = sadd.s32 4294967294, %s982_s18   ;;  %s982_s18 = sphi %s1024_s18, %s1359_s18   ;;  %s978_s17 = sphi %s1022_s17, %s1358_s17   ;;  %s974_s16 = sphi %s1020_s16, %s1357_s16   ;;  %s970_s15 = sphi %s1018_s15, %s1356_s15  }
   0x9   : > { %s1043_s21 = sadd.s32 1, %s982_s18   ;;  %s28_s22 = sadd.s32 1, %s978_s17 }
   0xa   : > { %s25_s23 = ssub.s32 %s982_s18, %s1043_s21  ;;  %p35_p0 = scmp.ne.s32.totalorder %s978_s17, %s974_s16 }
   0xb   : > { %p26_p1 = scmp.eq.s32.totalorder %s25_s23, 0  ;;  %p36_p2 = scmp.eq.s32.totalorder %s982_s18, 0 }
   0xc   : > { %p86_p3 = scmp.eq.s32.totalorder %s1039_s19, 1  ;;  %p91_p4 = scmp.ne.s32.totalorder %s974_s16, %s970_s15 }
   0xd   : > { %s1055_s24 = scalar_select %p26_p1, %s978_s17, %s28_s22  }
   0xe   : > { %p37_p5 = por %p36_p2, %p35_p0  ;;  %p1057_p6 = por %p86_p3, %p35_p0 }
   0xf   : > { %p92_p7 = scmp.eq.s32.totalorder %s1346_s20, 1  ;;  %p682_p9 = scmp.ge.s32.totalorder %s982_s18, 2 }
  0x11   : > { %p1063_p8 = por %p92_p7, %p91_p4  ;;  %163 = sbr.rel (%p682_p9) target bundleno = 36 (0x24), region = 20 }
  0x18   : > { %166 = sbr.rel (!%p37_p5) target bundleno = 36 (0x24), region = 24  ;;  %s168_s27 = sand.u32 (%p37_p5), 1, %s978_s17  }
  0x19   : > { %s684_s28 = sshll.u32 (%p37_p5), %s982_s18, 3  ;;  %s683_s29 = sshll.u32 (%p37_p5), %s168_s27, 5 }
  0x1a   : > { %s1351_s0 = sld [smem:[#allocation10_spill]] (%p37_p5)  ;;  %s170_s7 = scalar_lea.vmem (%p37_p5), [#allocation2], %s683_s29 }
  0x20   : > { %s172_s6 = scalar_lea.vmem %s1351_s0, %s684_s28 }
  0x21   : > { %v206_v0 = vld [vmem:[%s172_s6] sm:$0xff]  ;;  %v208_v1 = vld [vmem:[%s172_s6 + $0x10] sm:$0xff] }
  0x22   : > { %v210_v2 = vld [vmem:[%s172_s6 + $0x20] sm:$0xff]  ;;  %207 = vst [vmem:[%s170_s7] sm:$0xff] %v206_v0  ;;  %209 = vst [vmem:[%s170_s7 + $0x8] sm:$0xff] %v208_v1  ;;  %v212_v3 = vld [vmem:[%s172_s6 + $0x30] sm:$0xff] }
  0x23   : > { %211 = vst [vmem:[%s170_s7 + $0x10] sm:$0xff] %v210_v2  ;;  %213 = vst [vmem:[%s170_s7 + $0x18] sm:$0xff] %v212_v3 }
  0x24 PF: > { %p685_p10 = scmp.ge.s32.totalorder %s982_s18, 1  ;;  %p218_p11 = scmp.lt.s32.totalorder %s982_s18, 3 }
  0x26   : > { %p219_p12 = pnand %p685_p10, %p218_p11 }
  0x27   : > { %s1078_s8 = sand.u32 (!%p219_p12), 1, %s974_s16   ;;  %v984_v4 = vmov (!%p219_p12), 0.0|0.0   ;;  %vm985_vm0 = vmmov (!%p219_p12), 0   ;;  %v986_v5 = vmov (!%p219_p12), 0.0   ;;  %s1352_s1 = sld [smem:[#allocation11_spill]] (!%p219_p12)  ;;  %vm281_vm1 = vcmask (!%p219_p12), 261120  }
  0x28   : > { %222 = sbr.rel (%p219_p12) target bundleno = 360 (0x168), region = 62  ;;  %795 = vmatprep.subr.bf16.mxu0 (!%p219_p12), %v984_v4  ;;  %s686_s9 = sshll.u32 (!%p219_p12), %s1078_s8, 5  ;;  %801 = vmatprep.subr.bf16.mxu1 (!%p219_p12), %v984_v4 }
  0x29   : > { %744 = vmatprep.mubr.msk.f32.mxu0 (!%p219_p12), %vm985_vm0, %v986_v5  ;;  %771 = vmatprep.mubr.msk.f32.mxu1 (!%p219_p12), %vm985_vm0, %v986_v5  ;;  %s227_s10 = scalar_lea.vmem (!%p219_p12), [#allocation2], %s686_s9  ;;  %s687_s22 = sshll.u32 (!%p219_p12), %s1078_s8, 6 }
  0x2a   : > { %v277_v6 = vld [vmem:[%s227_s10] sm:$0xff] (!%p219_p12)  ;;  %v278_v7 = vld [vmem:[%s227_s10 + $0x8] sm:$0xff] (!%p219_p12)  ;;  %v279_v8 = vld [vmem:[%s227_s10 + $0x10] sm:$0xff] (!%p219_p12)  ;;  %s1184_s23 = scalar_lea.vmem (!%p219_p12), [#allocation3], %s687_s22  ;;  %s1187_s27 = scalar_lea.vmem (!%p219_p12), [#allocation5], %s687_s22 }
  0x2b   : > { %v796_v9 = vpack.c.bf16 (!%p219_p12), %v278_v7, %v277_v6  ;;  %v280_v10 = vld [vmem:[%s227_s10 + $0x18] sm:$0xff] (!%p219_p12)  ;;  %s523_s28 = sshll.u32 (!%p219_p12), %s1184_s23, 4  ;;  %s689_s29 = sshll.u32 (!%p219_p12), %s1078_s8, 2  ;;  %s1204_s28 = int_to_ptr.vmem [resolvable:$true] %s523_s28 }
  0x2c   : > { %v799_v11 = vpack.c.bf16 (!%p219_p12), %v280_v10, %v279_v8  ;;  %s538_s30 = sshll.u32 (!%p219_p12), %s1187_s27, 4  ;;  %s710_s5 = sshll.u32 (!%p219_p12), %s1039_s19, 7  ;;  %s1215_s30 = int_to_ptr.vmem [resolvable:$true] %s538_s30 }
  0x2d   : > { %797 = vmatpush3.bf16.msra.mxu0 (!%p219_p12), %v796_v9  ;;  %803 = vmatpush3.bf16.msra.mxu1 (!%p219_p12), %v796_v9  ;;  %v260_v12 = vld [vmem:[%s1352_s1] sm:$0xff] (!%p219_p12)  ;;  %v269_v13 = vld [vmem:[%s1352_s1 + $0x48] sm:$0xff] (!%p219_p12)  ;;  %v270_v15 = vld [vmem:[%s1352_s1 + $0x50] sm:$0xff] (!%p219_p12)  ;;  %s1213_s9 = scalar_lea.hbm (!%p219_p12), %s1343_s2, %s710_s5  ;;  %s1219_s11 = scalar_lea.vmem (!%p219_p12), [#allocation7], %s689_s29 }
  0x2e   : > { %798 = vmatprep.subr.bf16.mxu0 (!%p219_p12), %v984_v4  ;;  %802 = vmatprep.subr.bf16.mxu1 (!%p219_p12), %v984_v4  ;;  %v261_v14 = vld [vmem:[%s1352_s1 + $0x8] sm:$0xff] (!%p219_p12)  ;;  %v262_v16 = vld [vmem:[%s1352_s1 + $0x10] sm:$0xff] (!%p219_p12)  ;;  %v271_v17 = vld [vmem:[%s1352_s1 + $0x58] sm:$0xff] (!%p219_p12)  ;;  %s554_s12 = sshll.u32 (!%p219_p12), %s1219_s11, 4  ;;  %s501_s14 = scalar_lea.sflag (!%p219_p12), [#allocation4], %s1078_s8  ;;  %s1260_s12 = int_to_ptr.vmem [resolvable:$true] %s554_s12 }
  0x2f   : > { %v263_v18 = vld [vmem:[%s1352_s1 + $0x18] sm:$0xff]  ;;  %v272_v19 = vld [vmem:[%s1352_s1 + $0x60] sm:$0xff]  ;;  %v273_v21 = vld [vmem:[%s1352_s1 + $0x68] sm:$0xff]  ;;  %s860_s22 = scalar_lea.vmem %s1204_s28, 1024  ;;  %s987_s6 = smov [#allocation3]  }
  0x30   : > { %v264_v20 = vld [vmem:[%s1352_s1 + $0x20] sm:$0xff]  ;;  %v265_v22 = vld [vmem:[%s1352_s1 + $0x28] sm:$0xff]  ;;  %v274_v23 = vld [vmem:[%s1352_s1 + $0x70] sm:$0xff]  ;;  %p861_p13 = scmp.ne.s32.totalorder %s1204_s28, %s860_s22  ;;  %s864_s7 = sshll.u32 %s987_s6, 4  ;;  %s865_s7 = int_to_ptr.vmem [resolvable:$false] %s864_s7 }
  0x31   : > { %800 = vmatpush3.bf16.msra.mxu0 %v799_v11  ;;  %804 = vmatpush3.bf16.msra.mxu1 %v799_v11  ;;  %v266_v24 = vld [vmem:[%s1352_s1 + $0x30] sm:$0xff]  ;;  %v275_v25 = vld [vmem:[%s1352_s1 + $0x78] sm:$0xff]  ;;  %v276_v27 = vld [vmem:[%s1352_s1 + $0x80] sm:$0xf]  ;;  %p867_p2 = scmp.lt.s32.totalorder %s1204_s28, %s865_s7 }
  0x32   : > { %v267_v26 = vld [vmem:[%s1352_s1 + $0x38] sm:$0xff]  ;;  %v268_v28 = vld [vmem:[%s1352_s1 + $0x40] sm:$0xff]  ;;  %p862_p0 = pnand %p861_p13, %p1057_p6 }
  0x34   : > { %745 = vmatmul.mubr.msk.f32.vlgmr.msra.gmra.mrb[0].mxu0 %vm281_vm1, %v260_v12  ;;  %772 = vmatmul.mubr.msk.f32.vlgmr.msra.gmra.mrb[0].mxu1 %vm281_vm1, %v269_v13  ;;  %p863_p1 = pneg %p862_p0 }
  0x35   : > { %747 = vmatprep.mubr.msk.f32.mxu0 %vm985_vm0, %v986_v5  ;;  %774 = vmatprep.mubr.msk.f32.mxu1 %vm985_vm0, %v986_v5 }
  0x38   : > { %748 = vmatmul.mubr.msk.f32.gmra.mrb[2].mxu0 %vm281_vm1, %v261_v14  ;;  %775 = vmatmul.mubr.msk.f32.gmra.mrb[2].mxu1 %vm281_vm1, %v270_v15 }
  0x39   : > { %750 = vmatprep.mubr.msk.f32.mxu0 %vm985_vm0, %v986_v5  ;;  %777 = vmatprep.mubr.msk.f32.mxu1 %vm985_vm0, %v986_v5 }
  0x3c   : > { %751 = vmatmul.mubr.msk.f32.gmra.mrb[4].mxu0 %vm281_vm1, %v262_v16  ;;  %778 = vmatmul.mubr.msk.f32.gmra.mrb[4].mxu1 %vm281_vm1, %v271_v17 }
  0x3d   : > { %753 = vmatprep.mubr.msk.f32.mxu0 %vm985_vm0, %v986_v5  ;;  %780 = vmatprep.mubr.msk.f32.mxu1 %vm985_vm0, %v986_v5 }
  0x40   : > { %754 = vmatmul.mubr.msk.f32.gmra.mrb[6].mxu0 %vm281_vm1, %v263_v18  ;;  %781 = vmatmul.mubr.msk.f32.gmra.mrb[6].mxu1 %vm281_vm1, %v272_v19 }
  0x41   : > { %756 = vmatprep.mubr.msk.f32.mxu0 %vm985_vm0, %v986_v5  ;;  %783 = vmatprep.mubr.msk.f32.mxu1 %vm985_vm0, %v986_v5 }
  0x44   : > { %757 = vmatmul.mubr.msk.f32.gmra.mrb[8].mxu0 %vm281_vm1, %v264_v20  ;;  %784 = vmatmul.mubr.msk.f32.gmra.mrb[8].mxu1 %vm281_vm1, %v273_v21 }
  0x45   : > { %759 = vmatprep.mubr.msk.f32.mxu0 %vm985_vm0, %v986_v5  ;;  %786 = vmatprep.mubr.msk.f32.mxu1 %vm985_vm0, %v986_v5 }
  0x48   : > { %760 = vmatmul.mubr.msk.f32.gmra.mrb[10].mxu0 %vm281_vm1, %v265_v22  ;;  %787 = vmatmul.mubr.msk.f32.gmra.mrb[10].mxu1 %vm281_vm1, %v274_v23 }
  0x49   : > { %762 = vmatprep.mubr.msk.f32.mxu0 %vm985_vm0, %v986_v5  ;;  %789 = vmatprep.mubr.msk.f32.mxu1 %vm985_vm0, %v986_v5 }
  0x4c   : > { %763 = vmatmul.mubr.msk.f32.gmra.mrb[12].mxu0 %vm281_vm1, %v266_v24  ;;  %790 = vmatmul.mubr.msk.f32.gmra.mrb[12].mxu1 %vm281_vm1, %v275_v25 }
  0x4d   : > { %765 = vmatprep.mubr.msk.f32.mxu0 %vm985_vm0, %v986_v5  ;;  %792 = vmatprep.mubr.msk.f32.mxu1 %vm985_vm0, %v986_v5 }
  0x50   : > { %766 = vmatmul.mubr.msk.f32.gmra.mrb[14].mxu0 %vm281_vm1, %v267_v26  ;;  %793 = vmatmul.mubr.msk.f32.gmra.mrb[14].mxu1 %vm281_vm1, %v276_v27 }
  0x51   : > { %768 = vmatprep.mubr.msk.f32.mxu0 %vm985_vm0, %v986_v5 }
  0x54   : > { %769 = vmatmul.mubr.msk.f32.gmra.mrb[16].mxu0 %vm281_vm1, %v268_v28 }
 0x107   : > { %v399_v29 = vpop.f32.mrb[0].mxu0  ;;  %v444_v30 = vpop.f32.mrb[0].mxu1 }
 0x108   : > { %483 = vst [vmem:[%s1184_s23] sm:$0xff] %v399_v29  ;;  %v746_v31 = vpop.f32.mrb[1].mxu0  ;;  %492 = vst [vmem:[%s1187_s27 + $0x8] sm:$0xff] %v444_v30  ;;  %v773_v32 = vpop.f32.mrb[1].mxu1 }
 0x10b   : > { %v404_v33 = vpop.f32.mrb[2].mxu0  ;;  %v449_v34 = vpop.f32.mrb[2].mxu1 }
 0x10c   : > { %484 = vst [vmem:[%s1184_s23 + $0x8] sm:$0xff] %v404_v33  ;;  %v749_v35 = vpop.f32.mrb[3].mxu0  ;;  %493 = vst [vmem:[%s1187_s27 + $0x10] sm:$0xff] %v449_v34  ;;  %v776_v36 = vpop.f32.mrb[3].mxu1 }
 0x10f   : > { %v409_v37 = vpop.f32.mrb[4].mxu0  ;;  %v454_v38 = vpop.f32.mrb[4].mxu1 }
 0x110   : > { %485 = vst [vmem:[%s1184_s23 + $0x10] sm:$0xff] %v409_v37  ;;  %v752_v39 = vpop.f32.mrb[5].mxu0  ;;  %494 = vst [vmem:[%s1187_s27 + $0x18] sm:$0xff] %v454_v38  ;;  %v779_v40 = vpop.f32.mrb[5].mxu1 }
 0x113   : > { %v414_v41 = vpop.f32.mrb[6].mxu0  ;;  %v459_v42 = vpop.f32.mrb[6].mxu1 }
 0x114   : > { %486 = vst [vmem:[%s1184_s23 + $0x18] sm:$0xff] %v414_v41  ;;  %v755_v43 = vpop.f32.mrb[7].mxu0  ;;  %495 = vst [vmem:[%s1187_s27 + $0x20] sm:$0xff] %v459_v42  ;;  %v782_v44 = vpop.f32.mrb[7].mxu1 }
 0x117   : > { %v419_v45 = vpop.f32.mrb[8].mxu0  ;;  %v464_v46 = vpop.f32.mrb[8].mxu1 }
 0x118   : > { %487 = vst [vmem:[%s1184_s23 + $0x20] sm:$0xff] %v419_v45  ;;  %v758_v47 = vpop.f32.mrb[9].mxu0  ;;  %496 = vst [vmem:[%s1187_s27 + $0x28] sm:$0xff] %v464_v46  ;;  %v785_v48 = vpop.f32.mrb[9].mxu1 }
 0x11b   : > { %v424_v49 = vpop.f32.mrb[10].mxu0  ;;  %v469_v50 = vpop.f32.mrb[10].mxu1 }
 0x11c   : > { %488 = vst [vmem:[%s1184_s23 + $0x28] sm:$0xff] %v424_v49  ;;  %v761_v51 = vpop.f32.mrb[11].mxu0  ;;  %497 = vst [vmem:[%s1187_s27 + $0x30] sm:$0xff] %v469_v50  ;;  %v788_v52 = vpop.f32.mrb[11].mxu1 }
 0x11f   : > { %v429_v53 = vpop.f32.mrb[12].mxu0  ;;  %v474_v54 = vpop.f32.mrb[12].mxu1 }
 0x120   : > { %489 = vst [vmem:[%s1184_s23 + $0x30] sm:$0xff] %v429_v53  ;;  %v764_v55 = vpop.f32.mrb[13].mxu0  ;;  %498 = vst [vmem:[%s1187_s27 + $0x38] sm:$0xff] %v474_v54  ;;  %v791_v56 = vpop.f32.mrb[13].mxu1 }
 0x123   : > { %v434_v57 = vpop.f32.mrb[14].mxu0  ;;  %v479_v58 = vpop.f32.mrb[14].mxu1 }
 0x124   : > { %490 = vst [vmem:[%s1184_s23 + $0x38] sm:$0xff] %v434_v57  ;;  %v767_v59 = vpop.f32.mrb[15].mxu0  ;;  %499 = vst [vmem:[%s1219_s11] sm:$0xf] %v479_v58  ;;  %v794_v60 = vpop.f32.mrb[15].mxu1  ;;  %s866_s23 = scalar_lea.vmem %s865_s7, 2048 }
 0x125   : > { %p868_p3 = scmp.lt.s32.totalorder %s866_s23, %s860_s22 }
 0x127   : > { %p869_p4 = por %p868_p3, %p867_p2 }
 0x129   : > { %p870_p5 = pnand %p869_p4, %p863_p1 }
 0x12b   : > { %873 = shalt.err (!%p870_p5)
}
 0x12c   : > { %s874_s29 = scalar_lea.hbm %s1213_s9, 1024  ;;  %s878_s6 = scalar_lea.hbm %s1343_s2, 2048 }
 0x12d   : > { %p875_p7 = scmp.ne.s32.totalorder %s1213_s9, %s874_s29  ;;  %p879_p12 = scmp.lt.u32.totalorder %s1213_s9, %s1343_s2 }
 0x12e   : > { %p880_p13 = scmp.lt.u32.totalorder %s878_s6, %s874_s29  ;;  %p882_p1 = scmp.lt.u32.totalorder %s874_s29, %s1213_s9 }
 0x12f   : > { %p876_p10 = pnand %p875_p7, %p1057_p6 }
 0x130   : > { %p881_p0 = por %p880_p13, %p879_p12 }
 0x131   : > { %p877_p11 = pneg %p876_p10 }
 0x132   : > { %p883_p2 = por %p882_p1, %p881_p0 }
 0x134   : > { %p884_p3 = pnand %p883_p2, %p877_p11 }
 0x136   : > { %887 = shalt.err (!%p884_p3)
}
 0x137   : > { %s988_s22 = smov 128   ;;  %s989_s20 = smov 256   ;;  %v439_v61 = vpop.f32.mrb[16].mxu0 }
 0x138   : > { %s990_s10 = smov 8   ;;  %s1256_s29 = scalar_lea.hbm %s1344_s3, %s710_s5  ;;  %491 = vst [vmem:[%s1187_s27] sm:$0xff] %v439_v61  ;;  %v770_v62 = vpop.f32.mrb[17].mxu0 }
 0x139   : > { %805 = dma.vmem_to_hbm [thread:$0]  (%p1057_p6), %s1204_s28, 1024, %s1213_s9, %s501_s14, %s988_s22, %s989_s20, %s990_s10  }
 0x13a   : > { %s1353_s6 = sshll.u32 %s1039_s19, 6  ;;  %s1354_s8 = sand.u32 1, %s1039_s19  }
 0x13b   : > { %s1267_s1 = scalar_lea.hbm %s1345_s4, %s1353_s6  ;;  %s1272_s28 = scalar_lea.sflag [#allocation6], %s1354_s8 }
 0x13c   : > { %s888_s9 = scalar_lea.vmem %s1215_s30, 1024  ;;  %s991_s5 = smov [#allocation5]  }
 0x13d   : > { %p889_p4 = scmp.ne.s32.totalorder %s1215_s30, %s888_s9  ;;  %s892_s11 = sshll.u32 %s991_s5, 4  ;;  %s893_s11 = int_to_ptr.vmem [resolvable:$false] %s892_s11 }
 0x13e   : > { %s894_s14 = scalar_lea.vmem %s893_s11, 2048  ;;  %p895_p10 = scmp.lt.s32.totalorder %s1215_s30, %s893_s11 }
 0x13f   : > { %p890_p5 = pnand %p889_p4, %p1057_p6  ;;  %p896_p11 = scmp.lt.s32.totalorder %s894_s14, %s888_s9 }
 0x141   : > { %p891_p7 = pneg %p890_p5  ;;  %p897_p12 = por %p896_p11, %p895_p10 }
 0x143   : > { %p898_p13 = pnand %p897_p12, %p891_p7 }
 0x145   : > { %901 = shalt.err (!%p898_p13)
}
 0x146   : > { %s902_s0 = scalar_lea.hbm %s1256_s29, 1024  ;;  %s906_s13 = scalar_lea.hbm %s1344_s3, 2048 }
 0x147   : > { %p903_p0 = scmp.ne.s32.totalorder %s1256_s29, %s902_s0  ;;  %p907_p3 = scmp.lt.u32.totalorder %s1256_s29, %s1344_s3 }
 0x148   : > { %p908_p4 = scmp.lt.u32.totalorder %s906_s13, %s902_s0  ;;  %p910_p7 = scmp.lt.u32.totalorder %s902_s0, %s1256_s29 }
 0x149   : > { %p904_p1 = pnand %p903_p0, %p1057_p6 }
 0x14a   : > { %p909_p5 = por %p908_p4, %p907_p3 }
 0x14b   : > { %p905_p2 = pneg %p904_p1 }
 0x14c   : > { %p911_p10 = por %p910_p7, %p909_p5 }
 0x14e   : > { %p912_p11 = pnand %p911_p10, %p905_p2 }
 0x150   : > { %915 = shalt.err (!%p912_p11)
}
 0x151   : > { %806 = dma.vmem_to_hbm [thread:$0]  (%p1057_p6), %s1215_s30, 1024, %s1256_s29, %s1272_s28, %s988_s22, %s989_s20, %s990_s10  }
 0x152   : > { %s916_s7 = scalar_lea.vmem %s1260_s12, 64  ;;  %s992_s8 = smov [#allocation7]  }
 0x153   : > { %p917_p12 = scmp.ne.s32.totalorder %s1260_s12, %s916_s7  ;;  %s920_s9 = sshll.u32 %s992_s8, 4  ;;  %s921_s9 = int_to_ptr.vmem [resolvable:$false] %s920_s9 }
 0x154   : > { %s922_s5 = scalar_lea.vmem %s921_s9, 128  ;;  %p923_p1 = scmp.lt.s32.totalorder %s1260_s12, %s921_s9 }
 0x155   : > { %p918_p13 = pnand %p917_p12, %p1057_p6  ;;  %p924_p2 = scmp.lt.s32.totalorder %s922_s5, %s916_s7 }
 0x157   : > { %p919_p0 = pneg %p918_p13  ;;  %p925_p3 = por %p924_p2, %p923_p1 }
 0x159   : > { %p926_p4 = pnand %p925_p3, %p919_p0 }
 0x15b   : > { %929 = shalt.err (!%p926_p4)
}
 0x15c   : > { %s930_s30 = scalar_lea.hbm %s1267_s1, 64  ;;  %s934_s10 = scalar_lea.hbm %s1345_s4, 128 }
 0x15d   : > { %p931_p5 = scmp.ne.s32.totalorder %s1267_s1, %s930_s30  ;;  %p935_p11 = scmp.lt.u32.totalorder %s1267_s1, %s1345_s4 }
 0x15e   : > { %p936_p12 = scmp.lt.u32.totalorder %s934_s10, %s930_s30  ;;  %p938_p0 = scmp.lt.u32.totalorder %s930_s30, %s1267_s1 }
 0x15f   : > { %p932_p7 = pnand %p931_p5, %p1057_p6 }
 0x160   : > { %p937_p13 = por %p936_p12, %p935_p11 }
 0x161   : > { %p933_p10 = pneg %p932_p7 }
 0x162   : > { %p939_p1 = por %p938_p0, %p937_p13 }
 0x164   : > { %p940_p2 = pnand %p939_p1, %p933_p10 }
 0x166   : > { %943 = shalt.err (!%p940_p2)
}
 0x167   : > { %807 = dma.vmem_to_hbm [thread:$0]  (%p1057_p6), %s1260_s12, 64, %s1267_s1, %s1272_s28  }
 0x168 PF: > { %s566_s14 = sand.u32 1, %s970_s15   ;;  %p812_p3 = pnand %p682_p9, %p1063_p8 }
 0x169   : > { %s567_s0 = scalar_lea.sflag [#allocation4], %s566_s14 }
 0x16a   : > { %961 = dma.done.wait (!%p812_p3), %s567_s0, 1024  }
 0x16b   : > { %963 = vsyncadd (!%p812_p3), %s567_s0, 4294966272  ;;  %s1355_s19 = sadd.s32 4294967294, %s982_s18  }
 0x16c   : > { %s575_s27 = sand.u32 1, %s1355_s19  }
 0x16d   : > { %s576_s13 = scalar_lea.sflag [#allocation6], %s575_s27 }
 0x16e   : > { %965 = dma.done.wait (!%p812_p3), %s576_s13, 1088  }
 0x16f   : > { %967 = vsyncadd (!%p812_p3), %s576_s13, 4294966208  ;;  %p18_p6 = scmp.ge.s32.totalorder %s1043_s21, 4   ;;  %s1356_s15 = smov %s974_s16 }
 0x170   : > { %s1357_s16 = smov %s978_s17  ;;  %s1358_s17 = smov %s1055_s24 }
 0x171   : > { %s1359_s18 = smov %s1043_s21  ;;  %20 = sbr.rel (!%p18_p6) target bundleno = 8 (0x8), region = 138 }
 0x178   :  { %590 = vsyncpa [#allocation4], 1 }
 0x179   :  { %592 = vsyncpa [#allocation4 + $0x1], 1 }
 0x17a   :  { %593 = vsyncpa [#allocation6], 1 }
 0x17b   :  { %595 = vsyncpa [#allocation6 + $0x1], 1 }

</bundles_post_ra>
